<compile_context>
chip_gen: v7x
topology: tpu7x:2x2x1
jax: 0.10.0
libtpu: 0.0.40
codegen_flags: <defaults>
</compile_context>

<pallas_src>
import math
from functools import partial

import jax
import jax.numpy as jnp
import numpy as np
from jax import lax
from jax.experimental import pallas as pl
from jax.experimental.pallas import tpu as pltpu


# ----------------------------- Pallas kernel -------------------------------
def comsim_kernel(xbd_ref, src_ref, out_ref):
    """One tgt-len tile of the ComSim similarity.

    xbd_ref : [bsz, bsz*H]  block-diagonal linear0 output (resident, tiny)
    src_ref : [TT, bsz*H]   contiguous 2-D src tile (streamed from HBM)
    out_ref : [bsz, TT]     lane-dense similarity tile

    out[b, t] = sum_h x[b, h] * src[t, b, h]  ==  (X_bd @ src2d_tile.T)[b, t]
    Single MXU contraction, natively lane-dense result: no VPU broadcast, no
    XLU reduce, no transpose, no materialized temporaries.
    """
    out_ref[...] = lax.dot_general(
        xbd_ref[...], src_ref[...],
        dimension_numbers=(((1,), (1,)), ((), ())),
        preferred_element_type=jnp.float32,
    )


# ------------------------------ helpers --------------------------------------
def prepare_params(w0, b0):
    """One-time weight prep: fold 1/sqrt(H) into linear0 (zero per-forward cost)."""
    h = w0.shape[0]
    scale = jnp.float32(1.0 / math.sqrt(float(h)))
    return (w0 * scale).astype(jnp.float32), (b0 * scale).astype(jnp.float32)[None, :]


def _pick_tgt_tile(tgt_len, bsz, h, budget_bytes=20 * 1024 * 1024):
    """Largest tgt tile whose *layout-padded* pipeline footprint fits the budget.

    Real VMEM sizes are used: the src block's minor dim pads to a multiple of
    128 lanes, the output block's bsz pads to a multiple of 8 sublanes, and
    both are double-buffered by the Pallas pipeline; the resident X_bd block
    is added on top.  Tiles are arbitrary 128-multiples (not just powers of
    two), and when >= 2 tiles are possible we force >= 2 grid steps so the
    "parallel" axis can feed both v7x TensorCores (neutral on v5e/v6e).
    """
    if tgt_len <= 128:
        # Single full-array block: block dims == array dims, no padding anywhere.
        return tgt_len

    lane_pad = ((bsz * h + 127) // 128) * 128          # src minor dim in VMEM
    sub_pad = ((bsz + 7) // 8) * 8                     # out/x_bd major dim in VMEM
    per_row = 2 * lane_pad * 4 + 2 * sub_pad * 4       # dbl-buffered src + out rows (f32)
    resident = sub_pad * lane_pad * 4                  # x_bd block
    max_tt = max(((budget_bytes - resident) // per_row) // 128 * 128, 128)

    t_aligned = ((tgt_len + 127) // 128) * 128
    tt = min(t_aligned, max_tt)
    if tt >= t_aligned and t_aligned >= 256:
        # Split so n_tiles >= 2 (v7x megacore); still a 128-multiple.
        tt = ((t_aligned // 2 + 127) // 128) * 128
    return tt


# ------------------------------ JAX wrapper ---------------------------------
@jax.jit
def comsim_forward(batch_nodes, batch_nodes_exe, src, graph_dict, w0_scaled, b0_scaled):
    """Mirrors ComSimModel.forward.

    batch_nodes:     [bsz, tgt_len] int32   (indices into graph_dict)
    batch_nodes_exe: [bsz, tgt_len] int32   (0/1 flags)
    src:             [tgt_len, bsz, H] f32  (native PyTorch layout; never copied/padded)
    returns (cosine_sim_matrix [bsz, 1, tgt_len], gate_x [bsz, 1])
    """
    tgt_len, bsz, h = src.shape

    exe = batch_nodes_exe == 1
    gate_x = jnp.any(exe, axis=1).astype(jnp.float32)[:, None]           # [bsz, 1]

    # doc_id = index of the LAST 1 in each row (arrays[::-1].index(1) semantics)
    idxs = jnp.arange(tgt_len, dtype=jnp.int32)
    doc_id = jnp.max(jnp.where(exe, idxs[None, :], -1), axis=1)          # -1 if none
    nodes = jnp.take_along_axis(batch_nodes, jnp.maximum(doc_id, 0)[:, None], axis=1)[:, 0]
    # TODO(synk): this [bsz, H] gather could be fused into the kernel with
    # PrefetchScalarGridSpec + pl.Element row blocks; it is negligible next to
    # the src traffic, so it stays in XLA glue here.
    new_x = graph_dict[nodes] * gate_x                                   # [bsz, H]

    # linear0 hoisted out of the kernel (tiny [bsz,H]x[H,H] matmul, 1/sqrt(H)
    # already folded into w0_scaled / b0_scaled at prepare_params time).
    x = lax.dot_general(
        new_x, w0_scaled,
        dimension_numbers=(((1,), (1,)), ((), ())),
        preferred_element_type=jnp.float32,
    ) + b0_scaled                                                        # [bsz, H]

    # Block-diagonal expansion so the per-batch q=1 similarity becomes a
    # single 2-D MXU contraction inside the kernel:
    #   X_bd[b, b'*H + k] = (b == b') * x[b, k]
    # TODO(synk): for large bsz this [bsz, bsz*H] expansion should be replaced
    # by a bsz-tiled grid axis (or a batched 'bh,tbh->bt' contraction); at the
    # small bsz used here it is a few KiB.
    eye = jnp.eye(bsz, dtype=jnp.float32)
    x_bd = (eye[:, :, None] * x[None, :, :]).reshape(bsz, bsz * h)       # [bsz, bsz*H]

    # Contiguous 2-D view of src (free reshape, no HBM copy, no padding).
    src2d = src.reshape(tgt_len, bsz * h)
    # TODO(synk): if numerics permit, casting src to bfloat16 (contracted on
    # the MXU with preferred_element_type=f32) would halve the dominant HBM
    # traffic; kept f32 here to match the f32 reference bit-for-bit tolerance.

    tt = _pick_tgt_tile(tgt_len, bsz, h)
    n_tiles = pl.cdiv(tgt_len, tt)
    t_out = n_tiles * tt                                                 # only the output is rounded up

    flops = 2 * t_out * bsz * bsz * h
    bytes_accessed = 4 * (src2d.size + x_bd.size + bsz * t_out)

    out2d = pl.pallas_call(
        comsim_kernel,
        out_shape=jax.ShapeDtypeStruct((bsz, t_out), jnp.float32),
        grid_spec=pltpu.PrefetchScalarGridSpec(
            num_scalar_prefetch=0,
            grid=(n_tiles,),
            in_specs=[
                pl.BlockSpec((bsz, bsz * h), lambda t: (0, 0)),   # X_bd (resident, tiny)
                pl.BlockSpec((tt, bsz * h), lambda t: (t, 0)),    # src tile, contiguous 2-D
            ],
            out_specs=pl.BlockSpec((bsz, tt), lambda t: (0, t)),  # lane-dense output tile
        ),
        compiler_params=pltpu.CompilerParams(
            dimension_semantics=("parallel",),    # disjoint output tiles -> megacore-shardable
            vmem_limit_bytes=32 * 1024 * 1024,    # tile picker budgets 20 MiB of blocks under this
        ),
        cost_estimate=pl.CostEstimate(
            flops=flops, transcendentals=0, bytes_accessed=bytes_accessed),
    )(x_bd, src2d)

    cos = out2d[:, :tgt_len][:, None, :]                                 # [bsz, 1, tgt_len]
    return cos, gate_x


# ------------------------------ pure-JAX ref ---------------------------------
def comsim_reference(batch_nodes, batch_nodes_exe, src, graph_dict, w0, b0):
    tgt_len, bsz, h = src.shape
    exe = batch_nodes_exe == 1
    gate_x = jnp.any(exe, axis=1).astype(jnp.float32)[:, None]
    idxs = jnp.arange(tgt_len, dtype=jnp.int32)
    doc_id = jnp.maximum(jnp.max(jnp.where(exe, idxs[None, :], -1), axis=1), 0)
    nodes = jnp.take_along_axis(batch_nodes, doc_id[:, None], axis=1)[:, 0]
    new_x = (graph_dict[nodes] * gate_x)[:, None, :]                     # [bsz, 1, H]
    x = new_x @ w0.T + b0
    cos = jnp.matmul(x, jnp.transpose(src, (1, 2, 0))) / jnp.sqrt(jnp.float32(h))
    return cos, gate_x


# --------------------------------- main --------------------------------------
if __name__ == "__main__":
    hidden_channels = 32  # == embed_dim
    gnn_nodes_num = 64
    tgt_len, bsz = 8, 2

    key = jax.random.PRNGKey(0)
    k_gd, k_w0, k_b0, k_src, k_bn = jax.random.split(key, 5)

    # TODO(synk): graph_dict is produced by the TransformerConv GNN in
    # init_graph_dict; here it is a deterministic random embedding table since
    # forward() only reads it.
    graph_dict = jax.random.normal(k_gd, (gnn_nodes_num, hidden_channels), jnp.float32)

    # linear0 parameters (PyTorch nn.Linear: y = x @ W.T + b, W is [out, in]).
    w0 = jax.random.normal(k_w0, (hidden_channels, hidden_channels), jnp.float32) * 0.1
    b0 = jax.random.normal(k_b0, (hidden_channels,), jnp.float32) * 0.1

    src = jax.random.normal(k_src, (tgt_len, bsz, hidden_channels), jnp.float32)

    batch_nodes = jax.random.randint(
        k_bn, (bsz, tgt_len), 0, gnn_nodes_num, dtype=jnp.int32
    )
    # row 0 has executable positions (tests the gather branch),
    # row 1 has none (tests the zeros / gate=0 branch).
    batch_nodes_exe = jnp.array(
        [[0, 1, 0, 1, 0, 0, 0, 0],
         [0, 0, 0, 0, 0, 0, 0, 0]], dtype=jnp.int32
    )

    # One-time (per-model) weight prep: fold 1/sqrt(H) into linear0.
    w0_scaled, b0_scaled = prepare_params(w0, b0)

    cos, gate = comsim_forward(
        batch_nodes, batch_nodes_exe, src, graph_dict, w0_scaled, b0_scaled
    )
    cos = jax.block_until_ready(cos)
    gate = jax.block_until_ready(gate)

    cos_ref, gate_ref = comsim_reference(
        batch_nodes, batch_nodes_exe, src, graph_dict, w0, b0
    )
    np.testing.assert_allclose(np.asarray(cos), np.asarray(cos_ref), rtol=1e-5, atol=1e-5)
    np.testing.assert_allclose(np.asarray(gate), np.asarray(gate_ref), rtol=0, atol=0)
    assert cos.shape == (bsz, 1, tgt_len) and gate.shape == (bsz, 1)

    print("KERNEL_OK")
</pallas_src>

<mosaic_0001>
module attributes {stable_mosaic.version = 11 : i64} {
  func.func @comsim_kernel(%arg0: i32, %arg1: memref<2x64xf32, #tpu.memory_space<vmem>>, %arg2: memref<8x64xf32, #tpu.memory_space<vmem>>, %arg3: memref<2x8xf32, #tpu.memory_space<vmem>>) attributes {dimension_semantics = [#tpu.dimension_semantics<parallel>], iteration_bounds = array<i64: 1>, scalar_prefetch = 0 : i64, scratch_operands = 0 : i64, tpu.core_type = #tpu.core_type<tc>, window_params = [{pipeline_mode = #tpu.pipeline_mode<synchronous>, transform_indices = @transform_0, window_bounds = array<i64: 2, 64>}, {transform_indices = @transform_1, window_bounds = array<i64: 8, 64>}, {transform_indices = @transform_2, window_bounds = array<i64: 2, 8>}]} {
    %c0 = arith.constant 0 : index
    %c0_0 = arith.constant 0 : index
    %0 = vector.load %arg1[%c0, %c0_0] : memref<2x64xf32, #tpu.memory_space<vmem>>, vector<2x64xf32>
    %c0_1 = arith.constant 0 : index
    %c0_2 = arith.constant 0 : index
    %1 = vector.load %arg2[%c0_1, %c0_2] : memref<8x64xf32, #tpu.memory_space<vmem>>, vector<8x64xf32>
    %cst = arith.constant dense<0.000000e+00> : vector<2x8xf32>
    %2 = tpu.matmul %0, %1, %cst {dimension_numbers = #tpu.dot_dimension_numbers<[1], [1], [0], [0], [0, 0, 1, 0], [], []>} : vector<2x64xf32>, vector<8x64xf32>, vector<2x8xf32> -> vector<2x8xf32>
    %c0_3 = arith.constant 0 : index
    %c0_4 = arith.constant 0 : index
    %3 = vector.load %arg3[%c0_3, %c0_4] : memref<2x8xf32, #tpu.memory_space<vmem>>, vector<2x8xf32>
    tpu.vector_store %arg3[%c0_3, %c0_4], %2 {strides = array<i32>} : memref<2x8xf32, #tpu.memory_space<vmem>>, vector<2x8xf32>,
    return
  }
  func.func @transform_0(%arg0: i32) -> (i32, i32) {
    %c0_i32 = arith.constant 0 : i32
    %c0_i32_0 = arith.constant 0 : i32
    %c0_i32_1 = arith.constant 0 : i32
    return %c0_i32, %c0_i32_0 : i32, i32
  }
  func.func @transform_1(%arg0: i32) -> (i32, i32) {
    %c0_i32 = arith.constant 0 : i32
    %c0_i32_0 = arith.constant 0 : i32
    return %arg0, %c0_i32 : i32, i32
  }
  func.func @transform_2(%arg0: i32) -> (i32, i32) {
    %c0_i32 = arith.constant 0 : i32
    %c0_i32_0 = arith.constant 0 : i32
    return %c0_i32, %arg0 : i32, i32
  }
}

</mosaic_0001>

<bundles_post_ra>
// kernel: comsim_forward.1
= control target key start
LH: loop header
LB: loop body
LE: loop exit
PB: predicated region body
PF: predicated region fallthrough
CT: control target
= control target key end

     0   :  { %vm14_vm0 = vcmask 523264   ;;  %v143_v1 = vmov 0.0   ;;  %vm144_vm1 = vmmov 0   ;;  %s179_s0 = inlined_call_operand.vmem [shape: f32[2,64], index: 0, kind: input, shape index: {}]   ;;  %s180_s1 = inlined_call_operand.vmem [shape: f32[8,64], index: 1, kind: input, shape index: {}]   ;;  %s181_s2 = inlined_call_operand.hbm [shape: f32[2,8], index: 2, kind: output, shape index: {}]  }
   0x1   :  { %v13_v0 = vld [vmem:[%s180_s1] sm:$0xff]  ;;  %111 = vmatprep.subr.mxu0 %v143_v1  ;;  %113 = vmatprep.mubr.msk.f32.mxu0 %vm144_vm1, %v143_v1 }
   0x2   :  { %7 = vsyncpa [#allocation3], 0  ;;  %112 = vmatpush3.xpose.msk.msra.mxu0 %vm14_vm0, %v13_v0  ;;  %v12_v2 = vld [vmem:[%s179_s0] sm:$0x3]  ;;  %s145_s13 = smov [#allocation2]   ;;  %vm91_vm2 = vcmask 58368  }
   0x3   :  { %s99_s14 = sshll.u32 %s145_s13, 4  ;;  %s100_s14 = int_to_ptr.vmem [resolvable:$true] %s99_s14 }
   0x4   :  { %s119_s1 = scalar_lea.vmem %s100_s14, 32  ;;  %p124_p1 = scmp.lt.s32.totalorder %s100_s14, %s100_s14 }
   0x5   :  { %114 = vmatmul.mubr.msk.f32.vlgmr.msra.gmra.mrb[0].mxu0 %vm14_vm0, %v12_v2  ;;  %p120_p0 = scmp.ne.s32.totalorder %s100_s14, %s119_s1  ;;  %p125_p2 = scmp.lt.s32.totalorder %s119_s1, %s119_s1 }
   0x7   :  { %p126_p3 = por %p125_p2, %p124_p1 }
   0x9   :  { %p127_p4 = pnand %p126_p3, %p120_p0 }
  0xd8   :  { %v87_v3 = vpop.f32.mrb[0].mxu0 }
  0xd9   :  { %92 = vst.msk [vmem:[#allocation2] sm:$0x3] %vm91_vm2, %v87_v3  ;;  %v115_v4 = vpop.f32.mrb[1].mxu0 }
  0xda   :  { %130 = shalt.err (!%p127_p4)
}
  0xdb   :  { %s131_s17 = scalar_lea.hbm %s181_s2, 32 }
  0xdc   :  { %p132_p5 = scmp.ne.s32.totalorder %s181_s2, %s131_s17  ;;  %p135_p6 = scmp.lt.u32.totalorder %s131_s17, %s181_s2 }
  0xde   :  { %p137_p7 = pnand %p135_p6, %p132_p5 }
  0xe0   :  { %140 = shalt.err (!%p137_p7)
}
  0xe1   :  { %102 = dma.vmem_to_hbm [thread:$0]  %s100_s14, 32, %s181_s2, [#allocation3]  }
  0xe2   :  { %141 = dma.done.wait [#allocation3], 32  }
  0xe3   :  { %142 = vsyncadd [#allocation3], 4294967264 }
  0xe4   :  { %106 = vsyncpa [#allocation3], 1 }

</bundles_post_ra>
